<compile_context>
chip_gen: v5e
topology: v5e:2x2
jax: 0.10.0
libtpu: 0.0.40
codegen_flags: <defaults>
</compile_context>

<pallas_src>
import functools

import jax
import jax.numpy as jnp
from jax.experimental import pallas as pl
from jax.experimental.pallas import tpu as pltpu

STATE_SPACE = 4
ACTION_SPACE = 2
HIDDEN = 64

# Packed bf16 weight-slab row layout (lane dim = HIDDEN = 64):
W1_ROW = 0          # rows [0, 16): W1 (4 valid rows, padded to 16 for bf16 tile alignment)
W2_ROW = 16         # rows [16, 80): W2 (64, 64)
W3_ROW = 80         # rows [80, 144): W3 zero-padded from (64, 2) to (64, 64)
WSLAB_ROWS = 144
BSLAB_ROWS = 8      # f32 bias slab: row 0 = b1, row 1 = b2, row 2 = b3 (padded to 64 lanes)


def _round_up(n, m):
    return (n + m - 1) // m * m


def _orthogonal(key, shape, gain):
    """Orthogonal init matching torch.nn.init.orthogonal_ semantics."""
    rows, cols = shape
    n = max(rows, cols)
    a = jax.random.normal(key, (n, n), dtype=jnp.float32)
    q, r = jnp.linalg.qr(a)
    q = q * jnp.sign(jnp.diag(r))[None, :]
    return gain * q[:rows, :cols]


def _actor_kernel(x_ref, w_ref, b_ref, out_ref):
    x = x_ref[...]                                                     # (TB, 4) f32

    # ---- layer 1 on the VPU: K=4 is too small to justify an MXU pass --------
    w1 = w_ref[W1_ROW:W1_ROW + STATE_SPACE, :].astype(jnp.float32)     # (4, 64)
    acc = b_ref[0:1, :]                                                # (1, 64) f32, broadcasts
    for k in range(STATE_SPACE):
        acc = acc + x[:, k:k + 1] * w1[k:k + 1, :]
    h1 = jnp.tanh(acc)                                                 # (TB, 64) f32

    # ---- layer 2 on the MXU: bf16 operands, f32 accumulate ------------------
    w2 = w_ref[W2_ROW:W2_ROW + HIDDEN, :]                              # (64, 64) bf16
    h2 = jnp.tanh(
        jnp.dot(h1.astype(jnp.bfloat16), w2, preferred_element_type=jnp.float32)
        + b_ref[1:2, :]
    )                                                                  # (TB, 64) f32

    # ---- output head (padded to 64 MXU lanes; only the first 2 are real) ----
    w3 = w_ref[W3_ROW:W3_ROW + HIDDEN, :]                              # (64, 64) bf16
    y = (
        jnp.dot(h2.astype(jnp.bfloat16), w3, preferred_element_type=jnp.float32)
        + b_ref[2:3, :]
    )                                                                  # (TB, 64) f32
    out_ref[...] = y[:, :ACTION_SPACE].astype(out_ref.dtype)


@functools.partial(jax.jit, static_argnames=("block_b",))
def actor_ortho1_forward(x, wslab, bslab, *, block_b=2048):
    # x.view(B, -1) equivalent
    B = x.shape[0]
    x2d = x.reshape(B, -1).astype(jnp.float32)

    TB = min(block_b, _round_up(B, 8))
    Bp = _round_up(B, TB)
    if Bp != B:
        x2d = jnp.pad(x2d, ((0, Bp - B), (0, 0)))
    grid = (Bp // TB,)

    cost = pl.CostEstimate(
        flops=2 * Bp * (STATE_SPACE * HIDDEN + HIDDEN * HIDDEN + HIDDEN * HIDDEN),
        transcendentals=2 * Bp * HIDDEN,
        bytes_accessed=(Bp * STATE_SPACE * 4 + Bp * ACTION_SPACE * 4
                        + wslab.size * 2 + bslab.size * 4),
    )

    out = pl.pallas_call(
        _actor_kernel,
        out_shape=jax.ShapeDtypeStruct((Bp, ACTION_SPACE), jnp.float32),
        grid=grid,
        in_specs=[
            pl.BlockSpec((TB, STATE_SPACE), lambda i: (i, 0)),   # streamed x tiles
            pl.BlockSpec(wslab.shape, lambda i: (0, 0)),         # VMEM-resident, DMA'd once
            pl.BlockSpec(bslab.shape, lambda i: (0, 0)),         # VMEM-resident, DMA'd once
        ],
        out_specs=pl.BlockSpec((TB, ACTION_SPACE), lambda i: (i, 0)),
        compiler_params=pltpu.CompilerParams(dimension_semantics=("parallel",)),
        cost_estimate=cost,
    )(x2d, wslab, bslab)
    return out[:B]


def init_params(key):
    k1, k2, k3 = jax.random.split(key, 3)
    # PyTorch Linear weight is (out, in); orthogonal_ applied there (gain=1 for all
    # three layers in the spec).  Transpose to (in, out) so the kernel computes x @ W + b.
    w1 = _orthogonal(k1, (HIDDEN, STATE_SPACE), gain=1.0).T      # (4, 64)
    w2 = _orthogonal(k2, (HIDDEN, HIDDEN), gain=1.0).T           # (64, 64)
    w3 = _orthogonal(k3, (ACTION_SPACE, HIDDEN), gain=1.0).T     # (64, 2)
    b1 = jnp.zeros((HIDDEN,), jnp.float32)
    b2 = jnp.zeros((HIDDEN,), jnp.float32)
    b3 = jnp.zeros((ACTION_SPACE,), jnp.float32)
    return w1, b1, w2, b2, w3, b3


def pack_params(w1, b1, w2, b2, w3, b3):
    """Pack all weights into one bf16 slab + all biases into one f32 slab (2 DMAs)."""
    w1p = jnp.zeros((W2_ROW, HIDDEN), jnp.float32).at[:STATE_SPACE].set(w1)
    w3p = jnp.zeros((HIDDEN, HIDDEN), jnp.float32).at[:, :ACTION_SPACE].set(w3)
    wslab = jnp.concatenate([w1p, w2, w3p], axis=0).astype(jnp.bfloat16)
    assert wslab.shape == (WSLAB_ROWS, HIDDEN)
    bslab = jnp.zeros((BSLAB_ROWS, HIDDEN), jnp.float32)
    bslab = bslab.at[0].set(b1).at[1].set(b2).at[2, :ACTION_SPACE].set(b3)
    return wslab, bslab


def _reference(x, wslab, bslab):
    """Plain-JAX reference mimicking the kernel math (bf16 dot operands, f32 accumulate)."""
    x = x.reshape(x.shape[0], -1).astype(jnp.float32)
    w1 = wslab[W1_ROW:W1_ROW + STATE_SPACE].astype(jnp.float32)
    w2 = wslab[W2_ROW:W2_ROW + HIDDEN]
    w3 = wslab[W3_ROW:W3_ROW + HIDDEN]
    h1 = jnp.tanh(x @ w1 + bslab[0])
    h2 = jnp.tanh(jnp.dot(h1.astype(jnp.bfloat16), w2,
                          preferred_element_type=jnp.float32) + bslab[1])
    y = jnp.dot(h2.astype(jnp.bfloat16), w3,
                preferred_element_type=jnp.float32) + bslab[2]
    return y[:, :ACTION_SPACE]


if __name__ == "__main__":
    key = jax.random.PRNGKey(0)
    pkey, xkey = jax.random.split(key)

    wslab, bslab = pack_params(*init_params(pkey))

    B = 8
    x = jax.random.normal(xkey, (B, STATE_SPACE), dtype=jnp.float32)

    out = jax.block_until_ready(actor_ortho1_forward(x, wslab, bslab))

    ref = _reference(x, wslab, bslab)
    assert out.shape == (B, ACTION_SPACE)
    assert jnp.allclose(out, ref, atol=2e-3, rtol=2e-3), "mismatch vs reference"
    print("KERNEL_OK")
</pallas_src>

<mosaic_0001>
module attributes {stable_mosaic.version = 11 : i64} {
  func.func @_actor_kernel(%arg0: i32, %arg1: memref<8x4xf32, #tpu.memory_space<vmem>>, %arg2: memref<144x64xbf16, #tpu.memory_space<vmem>>, %arg3: memref<8x64xf32, #tpu.memory_space<vmem>>, %arg4: memref<8x2xf32, #tpu.memory_space<vmem>>) attributes {dimension_semantics = [#tpu.dimension_semantics<parallel>], iteration_bounds = array<i64: 1>, scalar_prefetch = 0 : i64, scratch_operands = 0 : i64, tpu.core_type = #tpu.core_type<tc>, window_params = [{transform_indices = @transform_0, window_bounds = array<i64: 8, 4>}, {pipeline_mode = #tpu.pipeline_mode<synchronous>, transform_indices = @transform_1, window_bounds = array<i64: 144, 64>}, {pipeline_mode = #tpu.pipeline_mode<synchronous>, transform_indices = @transform_2, window_bounds = array<i64: 8, 64>}, {transform_indices = @transform_3, window_bounds = array<i64: 8, 2>}]} {
    %c0 = arith.constant 0 : index
    %c0_0 = arith.constant 0 : index
    %0 = vector.load %arg1[%c0, %c0_0] : memref<8x4xf32, #tpu.memory_space<vmem>>, vector<8x4xf32>
    %c0_1 = arith.constant 0 : index
    %c0_2 = arith.constant 0 : index
    %1 = vector.load %arg2[%c0_1, %c0_2] : memref<144x64xbf16, #tpu.memory_space<vmem>>, vector<4x64xbf16>
    %2 = arith.extf %1 : vector<4x64xbf16> to vector<4x64xf32>
    %c0_3 = arith.constant 0 : index
    %c0_4 = arith.constant 0 : index
    %3 = vector.load %arg3[%c0_3, %c0_4] : memref<8x64xf32, #tpu.memory_space<vmem>>, vector<1x64xf32>
    %4 = vector.extract_strided_slice %0 {offsets = [0, 0], sizes = [8, 1], strides = [1, 1]} : vector<8x4xf32> to vector<8x1xf32>
    %5 = vector.extract_strided_slice %2 {offsets = [0, 0], sizes = [1, 64], strides = [1, 1]} : vector<4x64xf32> to vector<1x64xf32>
    %6 = vector.broadcast %4 : vector<8x1xf32> to vector<8x64xf32>
    %7 = vector.broadcast %5 : vector<1x64xf32> to vector<8x64xf32>
    %8 = arith.mulf %6, %7 : vector<8x64xf32>
    %9 = vector.broadcast %3 : vector<1x64xf32> to vector<8x64xf32>
    %10 = arith.addf %9, %8 : vector<8x64xf32>
    %11 = vector.extract_strided_slice %0 {offsets = [0, 1], sizes = [8, 1], strides = [1, 1]} : vector<8x4xf32> to vector<8x1xf32>
    %12 = vector.extract_strided_slice %2 {offsets = [1, 0], sizes = [1, 64], strides = [1, 1]} : vector<4x64xf32> to vector<1x64xf32>
    %13 = vector.broadcast %11 : vector<8x1xf32> to vector<8x64xf32>
    %14 = vector.broadcast %12 : vector<1x64xf32> to vector<8x64xf32>
    %15 = arith.mulf %13, %14 : vector<8x64xf32>
    %16 = arith.addf %10, %15 : vector<8x64xf32>
    %17 = vector.extract_strided_slice %0 {offsets = [0, 2], sizes = [8, 1], strides = [1, 1]} : vector<8x4xf32> to vector<8x1xf32>
    %18 = vector.extract_strided_slice %2 {offsets = [2, 0], sizes = [1, 64], strides = [1, 1]} : vector<4x64xf32> to vector<1x64xf32>
    %19 = vector.broadcast %17 : vector<8x1xf32> to vector<8x64xf32>
    %20 = vector.broadcast %18 : vector<1x64xf32> to vector<8x64xf32>
    %21 = arith.mulf %19, %20 : vector<8x64xf32>
    %22 = arith.addf %16, %21 : vector<8x64xf32>
    %23 = vector.extract_strided_slice %0 {offsets = [0, 3], sizes = [8, 1], strides = [1, 1]} : vector<8x4xf32> to vector<8x1xf32>
    %24 = vector.extract_strided_slice %2 {offsets = [3, 0], sizes = [1, 64], strides = [1, 1]} : vector<4x64xf32> to vector<1x64xf32>
    %25 = vector.broadcast %23 : vector<8x1xf32> to vector<8x64xf32>
    %26 = vector.broadcast %24 : vector<1x64xf32> to vector<8x64xf32>
    %27 = arith.mulf %25, %26 : vector<8x64xf32>
    %28 = arith.addf %22, %27 : vector<8x64xf32>
    %29 = math.tanh %28 : vector<8x64xf32>
    %c16 = arith.constant 16 : index
    %c0_5 = arith.constant 0 : index
    %30 = vector.load %arg2[%c16, %c0_5] : memref<144x64xbf16, #tpu.memory_space<vmem>>, vector<64x64xbf16>
    %31 = arith.truncf %29 : vector<8x64xf32> to vector<8x64xbf16>
    %cst = arith.constant dense<0.000000e+00> : vector<8x64xf32>
    %32 = tpu.matmul %31, %30, %cst {dimension_numbers = #tpu.dot_dimension_numbers<[1], [0], [0], [1], [0, 0, 1, 1], [], []>} : vector<8x64xbf16>, vector<64x64xbf16>, vector<8x64xf32> -> vector<8x64xf32>
    %c1 = arith.constant 1 : index
    %c0_6 = arith.constant 0 : index
    %33 = vector.load %arg3[%c1, %c0_6] : memref<8x64xf32, #tpu.memory_space<vmem>>, vector<1x64xf32>
    %34 = vector.broadcast %33 : vector<1x64xf32> to vector<8x64xf32>
    %35 = arith.addf %32, %34 : vector<8x64xf32>
    %36 = math.tanh %35 : vector<8x64xf32>
    %c80 = arith.constant 80 : index
    %c0_7 = arith.constant 0 : index
    %37 = vector.load %arg2[%c80, %c0_7] : memref<144x64xbf16, #tpu.memory_space<vmem>>, vector<64x64xbf16>
    %38 = arith.truncf %36 : vector<8x64xf32> to vector<8x64xbf16>
    %cst_8 = arith.constant dense<0.000000e+00> : vector<8x64xf32>
    %39 = tpu.matmul %38, %37, %cst_8 {dimension_numbers = #tpu.dot_dimension_numbers<[1], [0], [0], [1], [0, 0, 1, 1], [], []>} : vector<8x64xbf16>, vector<64x64xbf16>, vector<8x64xf32> -> vector<8x64xf32>
    %c2 = arith.constant 2 : index
    %c0_9 = arith.constant 0 : index
    %40 = vector.load %arg3[%c2, %c0_9] : memref<8x64xf32, #tpu.memory_space<vmem>>, vector<1x64xf32>
    %41 = vector.broadcast %40 : vector<1x64xf32> to vector<8x64xf32>
    %42 = arith.addf %39, %41 : vector<8x64xf32>
    %43 = vector.extract_strided_slice %42 {offsets = [0, 0], sizes = [8, 2], strides = [1, 1]} : vector<8x64xf32> to vector<8x2xf32>
    %c0_10 = arith.constant 0 : index
    %c0_11 = arith.constant 0 : index
    %44 = vector.load %arg4[%c0_10, %c0_11] : memref<8x2xf32, #tpu.memory_space<vmem>>, vector<8x2xf32>
    tpu.vector_store %arg4[%c0_10, %c0_11], %43 {strides = array<i32>} : memref<8x2xf32, #tpu.memory_space<vmem>>, vector<8x2xf32>,
    return
  }
  func.func @transform_0(%arg0: i32) -> (i32, i32) {
    %c0_i32 = arith.constant 0 : i32
    %c0_i32_0 = arith.constant 0 : i32
    return %arg0, %c0_i32 : i32, i32
  }
  func.func @transform_1(%arg0: i32) -> (i32, i32) {
    %c0_i32 = arith.constant 0 : i32
    %c0_i32_0 = arith.constant 0 : i32
    %c0_i32_1 = arith.constant 0 : i32
    return %c0_i32, %c0_i32_0 : i32, i32
  }
  func.func @transform_2(%arg0: i32) -> (i32, i32) {
    %c0_i32 = arith.constant 0 : i32
    %c0_i32_0 = arith.constant 0 : i32
    %c0_i32_1 = arith.constant 0 : i32
    return %c0_i32, %c0_i32_0 : i32, i32
  }
  func.func @transform_3(%arg0: i32) -> (i32, i32) {
    %c0_i32 = arith.constant 0 : i32
    %c0_i32_0 = arith.constant 0 : i32
    return %arg0, %c0_i32 : i32, i32
  }
}

</mosaic_0001>

<bundles_post_ra>
// kernel: actor_ortho1_forward.1
= control target key start
LH: loop header
LB: loop body
LE: loop exit
PB: predicated region body
PF: predicated region fallthrough
CT: control target
= control target key end

     0   :  { %v218_v0 = vmov 0   ;;  %v219_v2 = vmov 2   ;;  %v220_v3 = vmov 1   ;;  %v221_v4 = vmov 3   ;;  %s286_s0 = inlined_call_operand.vmem [shape: f32[8,4], index: 0, kind: input, shape index: {}]   ;;  %s287_s2 = inlined_call_operand.vmem [shape: f32[8,64], index: 2, kind: input, shape index: {}]   ;;  %s288_s1 = inlined_call_operand.vmem [shape: bf16[144,64], index: 1, kind: input, shape index: {}]   ;;  %s289_s3 = inlined_call_operand.vmem [shape: f32[8,2], index: 3, kind: output, shape index: {}]  }
   0x1   :  { %206 = vset.pattern.permute.xlu0 %v218_v0  ;;  %v15_v1 = vld [vmem:[%s286_s0] sm:$0xff]  ;;  %208 = vset.pattern.permute.xlu1 %v219_v2  ;;  %v196_v6 = vld [vmem:[%s288_s1 + $0x18] sm:$0xff]  ;;  %v195_v7 = vld [vmem:[%s288_s1 + $0x10] sm:$0xff]  ;;  %vm85_vm0 = vcmask 523264   ;;  %vm154_vm1 = vcmask 15360  }
   0x2   :  { %21 = vperm.xlu0 %206, %v15_v1   ;;  %36 = vperm.xlu1 %208, %v15_v1   ;;  %v197_v5 = vld [vmem:[%s288_s1 + $0x20] sm:$0xff]  ;;  %v194_v8 = vld [vmem:[%s288_s1 + $0x8] sm:$0xff]  ;;  %v200_v31 = vld [vmem:[%s288_s1 + $0x38] sm:$0xff] }
   0x3   :  { %93 = vmatpush.bf16.msra.mxu0 %v197_v5  ;;  %v16_v9 = vld [vmem:[%s288_s1] sm:$0x3]  ;;  %v199_v32 = vld [vmem:[%s288_s1 + $0x30] sm:$0xff]  ;;  %v198_v33 = vld [vmem:[%s288_s1 + $0x28] sm:$0xff] }
   0x4   :  { %v201_v10 = vld [vmem:[%s288_s1 + $0x40] sm:$0xff]  ;;  %v17_v11 = vunpack.c.l.bf16 %v16_v9 }
   0x5   :  { %145 = vmatpush.bf16.msra.mxu1 %v201_v10  ;;  %v211_v15 = vld [vmem:[%s287_s2] ss:$0 sm:$0xff]  ;;  %v212_v34 = vld [vmem:[%s287_s2 + $0x1] ss:$0 sm:$0xff]  ;;  %v213_v40 = vld [vmem:[%s287_s2 + $0x2] ss:$0 sm:$0xff] }
   0x6   :  { %v24_v14 = vperm.slane %v17_v11, 0  ;;  %v32_v17 = vperm.slane %v17_v11, 1  ;;  %v39_v18 = vperm.slane %v17_v11, 2  ;;  %v46_v19 = vperm.slane %v17_v11, 3 }
   0x7   :  { %94 = vmatpush.bf16.msra.mxu0 %v196_v6 }
   0x9   :  { %146 = vmatpush.bf16.msra.mxu1 %v200_v31 }
   0xa   :  { %207 = vset.pattern.permute.xlu0 %v220_v3  ;;  %209 = vset.pattern.permute.xlu1 %v221_v4 }
   0xb   :  { %29 = vperm.xlu0 %207, %v15_v1   ;;  %43 = vperm.xlu1 %209, %v15_v1  }
   0xc   :  { %95 = vmatpush.bf16.msra.mxu0 %v195_v7 }
   0xd   :  { %147 = vmatpush.bf16.msra.mxu1 %v199_v32 }
  0x10   :  { %96 = vmatpush.bf16.msra.mxu0 %v194_v8 }
  0x11   :  { %148 = vmatpush.bf16.msra.mxu1 %v198_v33 }
  0x13   :  { %210 = vset.pattern.permute.xlu0 %v221_v4 }
  0x74   :  { %v22_v12 = vpop.permute.xlu0 %21  ;;  %v37_v13 = vpop.permute.xlu1 %36 }
  0x75   :  { %v25_v16 = vmul.f32 %v24_v14, %v22_v12  ;;  %v40_v24 = vmul.f32 %v39_v18, %v37_v13 }
  0x77   :  { %v27_v22 = vadd.f32 %v211_v15, %v25_v16 }
  0x7d   :  { %v30_v20 = vpop.permute.xlu0 %29  ;;  %v44_v21 = vpop.permute.xlu1 %43 }
  0x7e   :  { %v33_v23 = vmul.f32 %v32_v17, %v30_v20  ;;  %v47_v26 = vmul.f32 %v46_v19, %v44_v21 }
  0x80   :  { %v34_v25 = vadd.f32 %v33_v23, %v27_v22 }
  0x82   :  { %v41_v27 = vadd.f32 %v40_v24, %v34_v25 }
  0x84   :  { %v48_v28 = vadd.f32 %v47_v26, %v41_v27 }
  0x86   :  { %214 = vtanh.f32 %v48_v28 }
  0x8c   :  { %v215_v29 = vpop.eup %214 }
  0x8d   :  { %v58_v30 = vpack.c.bf16 %v215_v29, %v215_v29 }
  0x8f   :  { %176 = vmatmul.msk.bf16.vlgmr.msra.gmra.mxu0 %vm85_vm0, %v58_v30 }
 0x10c   :  { %v98_v35 = vpop.f32.mrf.mxu0 }
 0x10d   :  { %v99_v36 = vadd.f32 %v212_v34, %v98_v35 }
 0x10f   :  { %216 = vtanh.f32 %v99_v36 }
 0x114   :  { %v100_v37 = vpop.f32.mrf.mxu0 }
 0x115   :  { %v217_v38 = vpop.eup %216 }
 0x116   :  { %v111_v39 = vpack.c.bf16 %v217_v38, %v217_v38 }
 0x118   :  { %193 = vmatmul.msk.bf16.vlgmr.msra.gmra.mxu1 %vm85_vm0, %v111_v39 }
 0x195   :  { %v150_v41 = vpop.f32.mrf.mxu1 }
 0x196   :  { %v151_v42 = vadd.f32 %v213_v40, %v150_v41 }
 0x198   :  { %155 = vst.msk [vmem:[%s289_s3] sm:$0xff] %vm154_vm1, %v151_v42 }
 0x19d   :  { %v152_v43 = vpop.f32.mrf.mxu1 }

</bundles_post_ra>
